<compile_context>
chip_gen: v7x
topology: tpu7x:2x2x1
jax: 0.10.0
libtpu: 0.0.40
codegen_flags: <defaults>
</compile_context>

<pallas_src>
import jax
import jax.numpy as jnp
from jax.experimental import pallas as pl
from jax.experimental.pallas import tpu as pltpu


_VMEM_LIMIT_BYTES = 48 * 1024 * 1024   # < v7x 64 MiB physical, > default scoped limits
_VMEM_BUDGET_BYTES = 32 * 1024 * 1024  # budget for explicit pipeline buffers + scratch


def _round_up(v, m):
    return (v + m - 1) // m * m


def _pad2(a, shape, dtype):
    """Zero-pad a 2-D array to `shape` and cast; skips the copy when possible."""
    if a.shape == shape:
        return a.astype(dtype)
    return jnp.zeros(shape, dtype).at[: a.shape[0], : a.shape[1]].set(a.astype(dtype))


def _vmem_bytes(tm, tk, IN, OUT, out_bytes, k_tiles):
    """Conservative estimate of VMEM needed by the pipeline buffers + scratch."""
    wbuf = 1 if k_tiles == 1 else 2          # resident weights are single-buffered
    b = 2 * tm * IN * 2                      # x tile (bf16), double-buffered
    b += wbuf * (IN * tk * 2 + tk * 4 + tk * OUT * 2)   # w1(bf16), b1(f32), w2(bf16)
    b += OUT * 4                             # b2 (f32), single-buffered
    b += 2 * tm * OUT * out_bytes            # output tile, double-buffered
    b += tm * OUT * 4                        # f32 accumulator scratch
    b += tm * tk * 6                         # h (f32) + its bf16 copy (compiler scratch)
    return b


def _choose_row_tile(M, IN, OUT, out_bytes, tk, k_tiles):
    m8 = _round_up(max(M, 1), 8)
    tm = 8
    for cand in (1024, 512, 256, 128, 64, 32, 16, 8):
        if _vmem_bytes(cand, tk, IN, OUT, out_bytes, k_tiles) <= _VMEM_BUDGET_BYTES:
            tm = cand
            break
    tm = min(tm, m8)
    # Keep both v7x TensorCores busy: >= 2 tiles on the "parallel" row axis.
    if m8 > 8 and m8 // tm < 2:
        tm = _round_up(pl.cdiv(m8, 2), 8)
    return tm


def mlp_kernel(x_ref, w1_ref, b1_ref, w2_ref, b2_ref, o_ref, acc_ref):
    # x_ref: (tm, IN) bf16, w1_ref: (IN, tk) bf16, b1_ref: (1, tk) f32,
    # w2_ref: (tk, OUT) bf16, b2_ref: (1, OUT) f32,
    # o_ref: (tm, OUT) out_dtype, acc_ref: (tm, OUT) f32 scratch.
    k = pl.program_id(1)

    @pl.when(k == 0)
    def _init():
        acc_ref[...] = jnp.zeros_like(acc_ref)

    # fc1 chunk over the hidden dim: bf16 MXU matmul, f32 accumulation.
    h = jnp.dot(x_ref[...], w1_ref[...], preferred_element_type=jnp.float32)
    h = h + b1_ref[...]                 # bias broadcast (1, tk) over rows
    h = jnp.maximum(h, 0.1 * h)         # LeakyReLU(0.1), single VPU max

    # fc2 partial contribution of this hidden chunk.
    acc_ref[...] += jnp.dot(h.astype(jnp.bfloat16), w2_ref[...],
                            preferred_element_type=jnp.float32)

    @pl.when(k == pl.num_programs(1) - 1)
    def _finalize():
        o_ref[...] = (acc_ref[...] + b2_ref[...]).astype(o_ref.dtype)


def prepare_mlp_params(w1, b1, w2, b2):
    """Hoisted weight prep (transpose + bf16 cast + zero-pad). Call once, reuse.

    w1: (mid, in_dim), b1: (mid,)   (torch nn.Linear layout)
    w2: (out, mid),    b2: (out,)
    """
    mid, in_dim = w1.shape
    out_dim = w2.shape[0]

    IN = _round_up(in_dim, 128)
    MID = _round_up(mid, 128)
    OUT = _round_up(out_dim, 128)
    # Hidden-dim tile: keep the weights fully resident when modest, otherwise
    # stream the hidden dim in 512-wide chunks along the grid reduction axis.
    tk = MID if MID <= 4096 else 512
    MIDP = _round_up(MID, tk)

    # Zero padding keeps semantics exact: padded x cols / w1 rows contribute 0,
    # padded hidden cols get bias 0 -> LeakyReLU(0)=0 -> contribute 0 to fc2.
    params = dict(
        w1=_pad2(w1.T, (IN, MIDP), jnp.bfloat16),
        b1=_pad2(b1[None, :], (1, MIDP), jnp.float32),
        w2=_pad2(w2.T, (MIDP, OUT), jnp.bfloat16),
        b2=_pad2(b2[None, :], (1, OUT), jnp.float32),
        in_dim=in_dim, out_dim=out_dim, tk=tk,
    )
    return params


def mlp_apply(x, params, *, out_dtype=None):
    """MLP forward: fc2(LeakyReLU(0.1)(fc1(x))) with pre-prepared params."""
    w1t, b1p, w2t, b2p = params["w1"], params["b1"], params["w2"], params["b2"]
    in_dim, out_dim, tk = params["in_dim"], params["out_dim"], params["tk"]
    IN, MIDP = w1t.shape
    OUT = w2t.shape[1]
    k_tiles = MIDP // tk

    out_dtype = x.dtype if out_dtype is None else out_dtype   # bf16 halves writeback
    out_bytes = jnp.dtype(out_dtype).itemsize

    lead = x.shape[:-1]
    x2 = x.reshape(-1, in_dim)
    M = x2.shape[0]

    tm = _choose_row_tile(M, IN, OUT, out_bytes, tk, k_tiles)
    MP = _round_up(max(M, 1), tm)

    # Fast path: skip the pad copy when no padding is needed.
    if MP == M and IN == in_dim:
        xp = x2.astype(jnp.bfloat16)
    else:
        xp = jnp.zeros((MP, IN), jnp.bfloat16).at[:M, :in_dim].set(
            x2.astype(jnp.bfloat16))

    resident = k_tiles == 1  # weights fit in one hidden tile -> constant blocks

    def wspec(shape, index_map, single_buffer):
        # Constant-index blocks: single-buffered (double-buffering is VMEM waste).
        if single_buffer:
            return pl.BlockSpec(shape, index_map, pipeline_mode=pl.Buffered(1))
        return pl.BlockSpec(shape, index_map)

    flops = 2 * MP * (IN * MIDP + MIDP * OUT)
    bytes_accessed = (xp.size * 2 + w1t.size * 2 + w2t.size * 2
                      + b1p.size * 4 + b2p.size * 4 + MP * OUT * out_bytes)

    out = pl.pallas_call(
        mlp_kernel,
        out_shape=jax.ShapeDtypeStruct((MP, OUT), out_dtype),
        grid_spec=pltpu.PrefetchScalarGridSpec(
            num_scalar_prefetch=0,
            grid=(MP // tm, k_tiles),
            in_specs=[
                pl.BlockSpec((tm, IN), lambda i, k: (i, 0)),        # x rows
                wspec((IN, tk), lambda i, k: (0, k), resident),     # w1 chunk
                wspec((1, tk), lambda i, k: (0, k), resident),      # b1 chunk
                wspec((tk, OUT), lambda i, k: (k, 0), resident),    # w2 chunk
                wspec((1, OUT), lambda i, k: (0, 0), True),         # b2 (constant)
            ],
            out_specs=pl.BlockSpec((tm, OUT), lambda i, k: (i, 0)),
            scratch_shapes=[pltpu.VMEM((tm, OUT), jnp.float32)],
        ),
        compiler_params=pltpu.CompilerParams(
            dimension_semantics=("parallel", "arbitrary"),
            vmem_limit_bytes=_VMEM_LIMIT_BYTES),
        cost_estimate=pl.CostEstimate(flops=flops, transcendentals=0,
                                      bytes_accessed=bytes_accessed),
    )(xp, w1t, b1p, w2t, b2p)

    return out[:M, :out_dim].reshape(*lead, out_dim)


def mlp(x, w1, b1, w2, b2, *, out_dtype=None):
    """Convenience wrapper (prefer prepare_mlp_params + mlp_apply to hoist prep)."""
    return mlp_apply(x, prepare_mlp_params(w1, b1, w2, b2), out_dtype=out_dtype)


def mlp_ref(x, w1, b1, w2, b2):
    """Pure-JAX f32 reference (same semantics as the PyTorch module)."""
    h = x @ w1.T + b1
    h = jnp.where(h >= 0, h, 0.1 * h)
    return h @ w2.T + b2


if __name__ == "__main__":
    # Small shapes consistent with the module: batch=2, seq=8,
    # in_dim=16, middle_dim=32, out_dim=16.
    B, S, IN_DIM, MID_DIM, OUT_DIM = 2, 8, 16, 32, 16

    key = jax.random.PRNGKey(0)
    kx, kw1, kb1, kw2, kb2 = jax.random.split(key, 5)

    x = jax.random.normal(kx, (B, S, IN_DIM), jnp.float32)
    # torch nn.Linear layout: weight (out_features, in_features), bias (out_features,)
    w1 = jax.random.normal(kw1, (MID_DIM, IN_DIM), jnp.float32) * 0.2
    b1 = jax.random.normal(kb1, (MID_DIM,), jnp.float32) * 0.1
    w2 = jax.random.normal(kw2, (OUT_DIM, MID_DIM), jnp.float32) * 0.2
    b2 = jax.random.normal(kb2, (OUT_DIM,), jnp.float32) * 0.1

    params = prepare_mlp_params(w1, b1, w2, b2)   # weight prep hoisted: done once
    out = mlp_apply(x, params)
    out = jax.block_until_ready(out)

    ref = mlp_ref(x, w1, b1, w2, b2)
    assert out.shape == (B, S, OUT_DIM), out.shape
    # bf16 MXU inputs + f32 accumulation vs f32 reference -> loose tolerance.
    assert jnp.allclose(out, ref, atol=5e-2, rtol=5e-2), "mismatch vs reference"
    print("KERNEL_OK")
</pallas_src>

<mosaic_0001>
module attributes {stable_mosaic.version = 11 : i64} {
  func.func @mlp_kernel(%arg0: i32, %arg1: i32, %arg2: memref<8x128xbf16, #tpu.memory_space<vmem>>, %arg3: memref<128x128xbf16, #tpu.memory_space<vmem>>, %arg4: memref<1x128xf32, #tpu.memory_space<vmem>>, %arg5: memref<128x128xbf16, #tpu.memory_space<vmem>>, %arg6: memref<1x128xf32, #tpu.memory_space<vmem>>, %arg7: memref<8x128xf32, #tpu.memory_space<vmem>>, %arg8: memref<8x128xf32, #tpu.memory_space<vmem>>) attributes {dimension_semantics = [#tpu.dimension_semantics<parallel>, #tpu.dimension_semantics<arbitrary>], iteration_bounds = array<i64: 2, 1>, scalar_prefetch = 0 : i64, scratch_operands = 1 : i64, tpu.core_type = #tpu.core_type<tc>, window_params = [{transform_indices = @transform_0, window_bounds = array<i64: 8, 128>}, {pipeline_mode = #tpu.pipeline_mode<synchronous>, transform_indices = @transform_1, window_bounds = array<i64: 128, 128>}, {pipeline_mode = #tpu.pipeline_mode<synchronous>, transform_indices = @transform_2, window_bounds = array<i64: 1, 128>}, {pipeline_mode = #tpu.pipeline_mode<synchronous>, transform_indices = @transform_3, window_bounds = array<i64: 128, 128>}, {pipeline_mode = #tpu.pipeline_mode<synchronous>, transform_indices = @transform_4, window_bounds = array<i64: 1, 128>}, {transform_indices = @transform_5, window_bounds = array<i64: 8, 128>}]} {
    %c0_i32 = arith.constant 0 : i32
    %0 = arith.cmpi eq, %arg1, %c0_i32 : i32
    %1 = arith.extui %0 : i1 to i32
    %c0_i32_0 = arith.constant 0 : i32
    %2 = arith.cmpi ne, %1, %c0_i32_0 : i32
    scf.if %2 {
      %cst_16 = arith.constant 0.000000e+00 : f32
      %21 = vector.broadcast %cst_16 : f32 to vector<8x128xf32>
      %c0_17 = arith.constant 0 : index
      %c0_18 = arith.constant 0 : index
      %22 = vector.load %arg8[%c0_17, %c0_18] : memref<8x128xf32, #tpu.memory_space<vmem>>, vector<8x128xf32>
      tpu.vector_store %arg8[%c0_17, %c0_18], %21 {strides = array<i32>} : memref<8x128xf32, #tpu.memory_space<vmem>>, vector<8x128xf32>,
    } else {
    }
    %c0 = arith.constant 0 : index
    %c0_1 = arith.constant 0 : index
    %3 = vector.load %arg2[%c0, %c0_1] : memref<8x128xbf16, #tpu.memory_space<vmem>>, vector<8x128xbf16>
    %c0_2 = arith.constant 0 : index
    %c0_3 = arith.constant 0 : index
    %4 = vector.load %arg3[%c0_2, %c0_3] : memref<128x128xbf16, #tpu.memory_space<vmem>>, vector<128x128xbf16>
    %cst = arith.constant dense<0.000000e+00> : vector<8x128xf32>
    %5 = tpu.matmul %3, %4, %cst {dimension_numbers = #tpu.dot_dimension_numbers<[1], [0], [0], [1], [0, 0, 1, 1], [], []>} : vector<8x128xbf16>, vector<128x128xbf16>, vector<8x128xf32> -> vector<8x128xf32>
    %c0_4 = arith.constant 0 : index
    %c0_5 = arith.constant 0 : index
    %6 = vector.load %arg4[%c0_4, %c0_5] : memref<1x128xf32, #tpu.memory_space<vmem>>, vector<1x128xf32>
    %7 = vector.broadcast %6 : vector<1x128xf32> to vector<8x128xf32>
    %8 = arith.addf %5, %7 : vector<8x128xf32>
    %cst_6 = arith.constant 1.000000e-01 : f32
    %9 = vector.broadcast %cst_6 : f32 to vector<8x128xf32>
    %10 = arith.mulf %9, %8 : vector<8x128xf32>
    %11 = arith.maximumf %8, %10 : vector<8x128xf32>
    %c0_7 = arith.constant 0 : index
    %c0_8 = arith.constant 0 : index
    %12 = vector.load %arg8[%c0_7, %c0_8] : memref<8x128xf32, #tpu.memory_space<vmem>>, vector<8x128xf32>
    %13 = arith.truncf %11 : vector<8x128xf32> to vector<8x128xbf16>
    %c0_9 = arith.constant 0 : index
    %c0_10 = arith.constant 0 : index
    %14 = vector.load %arg5[%c0_9, %c0_10] : memref<128x128xbf16, #tpu.memory_space<vmem>>, vector<128x128xbf16>
    %cst_11 = arith.constant dense<0.000000e+00> : vector<8x128xf32>
    %15 = tpu.matmul %13, %14, %cst_11 {dimension_numbers = #tpu.dot_dimension_numbers<[1], [0], [0], [1], [0, 0, 1, 1], [], []>} : vector<8x128xbf16>, vector<128x128xbf16>, vector<8x128xf32> -> vector<8x128xf32>
    %16 = arith.addf %12, %15 : vector<8x128xf32>
    %c0_12 = arith.constant 0 : index
    %c0_13 = arith.constant 0 : index
    %17 = vector.load %arg8[%c0_12, %c0_13] : memref<8x128xf32, #tpu.memory_space<vmem>>, vector<8x128xf32>
    tpu.vector_store %arg8[%c0_12, %c0_13], %16 {strides = array<i32>} : memref<8x128xf32, #tpu.memory_space<vmem>>, vector<8x128xf32>,
    %c0_i32_14 = arith.constant 0 : i32
    %18 = arith.cmpi eq, %arg1, %c0_i32_14 : i32
    %19 = arith.extui %18 : i1 to i32
    %c0_i32_15 = arith.constant 0 : i32
    %20 = arith.cmpi ne, %19, %c0_i32_15 : i32
    scf.if %20 {
      %c0_16 = arith.constant 0 : index
      %c0_17 = arith.constant 0 : index
      %21 = vector.load %arg8[%c0_16, %c0_17] : memref<8x128xf32, #tpu.memory_space<vmem>>, vector<8x128xf32>
      %c0_18 = arith.constant 0 : index
      %c0_19 = arith.constant 0 : index
      %22 = vector.load %arg6[%c0_18, %c0_19] : memref<1x128xf32, #tpu.memory_space<vmem>>, vector<1x128xf32>
      %23 = vector.broadcast %22 : vector<1x128xf32> to vector<8x128xf32>
      %24 = arith.addf %21, %23 : vector<8x128xf32>
      %c0_20 = arith.constant 0 : index
      %c0_21 = arith.constant 0 : index
      %25 = vector.load %arg7[%c0_20, %c0_21] : memref<8x128xf32, #tpu.memory_space<vmem>>, vector<8x128xf32>
      tpu.vector_store %arg7[%c0_20, %c0_21], %24 {strides = array<i32>} : memref<8x128xf32, #tpu.memory_space<vmem>>, vector<8x128xf32>,
    } else {
    }
    return
  }
  func.func @transform_0(%arg0: i32, %arg1: i32) -> (i32, i32) {
    %c0_i32 = arith.constant 0 : i32
    %c0_i32_0 = arith.constant 0 : i32
    return %arg0, %c0_i32 : i32, i32
  }
  func.func @transform_1(%arg0: i32, %arg1: i32) -> (i32, i32) {
    %c0_i32 = arith.constant 0 : i32
    %c0_i32_0 = arith.constant 0 : i32
    return %c0_i32, %arg1 : i32, i32
  }
  func.func @transform_2(%arg0: i32, %arg1: i32) -> (i32, i32) {
    %c0_i32 = arith.constant 0 : i32
    %c0_i32_0 = arith.constant 0 : i32
    return %c0_i32, %arg1 : i32, i32
  }
  func.func @transform_3(%arg0: i32, %arg1: i32) -> (i32, i32) {
    %c0_i32 = arith.constant 0 : i32
    %c0_i32_0 = arith.constant 0 : i32
    return %arg1, %c0_i32 : i32, i32
  }
  func.func @transform_4(%arg0: i32, %arg1: i32) -> (i32, i32) {
    %c0_i32 = arith.constant 0 : i32
    %c0_i32_0 = arith.constant 0 : i32
    %c0_i32_1 = arith.constant 0 : i32
    return %c0_i32, %c0_i32_0 : i32, i32
  }
  func.func @transform_5(%arg0: i32, %arg1: i32) -> (i32, i32) {
    %c0_i32 = arith.constant 0 : i32
    %c0_i32_0 = arith.constant 0 : i32
    return %arg0, %c0_i32 : i32, i32
  }
}

</mosaic_0001>

<bundles_post_ra>
// kernel: tpu_custom_call.1
= control target key start
LH: loop header
LB: loop body
LE: loop exit
PB: predicated region body
PF: predicated region fallthrough
CT: control target
= control target key end

     0   :  { %10 = vsyncpa [#allocation4], 0  ;;  %s1348_s0 = inlined_call_operand.hbm [shape: bf16[16,128], index: 0, kind: input, shape index: {}]   ;;  %s1349_s1 = inlined_call_operand.hbm [shape: bf16[128,128], index: 1, kind: input, shape index: {}]   ;;  %s1350_s2 = inlined_call_operand.vmem [shape: f32[1,128], index: 2, kind: input, shape index: {}]   ;;  %s1351_s3 = inlined_call_operand.hbm [shape: bf16[128,128], index: 3, kind: input, shape index: {}]   ;;  %s1352_s4 = inlined_call_operand.vmem [shape: f32[1,128], index: 4, kind: input, shape index: {}]   ;;  %s1353_s5 = inlined_call_operand.hbm [shape: f32[16,128], index: 5, kind: output, shape index: {}]  }
   0x1   :  { %12 = vsyncpa [#allocation4 + $0x1], 0 }
   0x2   :  { %13 = vsyncpa [#allocation7], 0 }
   0x3   :  { %14 = vsyncpa [#allocation5], 0 }
   0x4   :  { %16 = vsyncpa [#allocation5 + $0x1], 0  ;;  %s1088_s18 = smov 0   ;;  %s1090_s19 = smov 0  }
   0x5   :  { %s1092_s20 = smov 0   ;;  %s1094_s21 = smov 0  }
   0x6   :  { %s1096_s22 = smov 0   ;;  %s1098_s23 = smov 0  }
   0x7 LB: > { %s679_s24 = sadd.s32 4294967295, %s1048_s23   ;;  %s680_s25 = sadd.s32 4294967294, %s1048_s23   ;;  %s1048_s23 = sphi %s1098_s23, %s22_s23   ;;  %s1044_s22 = sphi %s1096_s22, %s1375_s22   ;;  %s1040_s21 = sphi %s1094_s21, %s1374_s21   ;;  %s1036_s20 = sphi %s1092_s20, %s1373_s20   ;;  %s1032_s19 = sphi %s1090_s19, %s1372_s19   ;;  %s1028_s18 = sphi %s1088_s18, %s1371_s18  }
   0x8   : > { %p54_p0 = scmp.ne.s32.totalorder %s1032_s19, %s1028_s18  ;;  %p1122_p1 = scmp.eq.s32.totalorder %s679_s24, 0 }
   0x9   : > { %p1126_p2 = scmp.eq.s32.totalorder %s679_s24, 1  ;;  %p183_p3 = scmp.eq.s32.totalorder %s680_s25, 1 }
   0xa   : > { %s1358_s26 = scalar_select %p1122_p1, 1, 0 }
   0xb   : > { %p1132_p4 = por %p1122_p1, %p54_p0  ;;  %p681_p5 = scmp.ge.s32.totalorder %s1048_s23, 1 }
   0xc   : > { %p1137_p6 = por %p183_p3, %p54_p0  ;;  %p190_p7 = scmp.lt.s32.totalorder %s1048_s23, 3 }
   0xd   : > { %s1360_s28 = scalar_select %p1132_p4, 1, 0 }
   0xe   : > { %s1361_s29 = scalar_select %p1137_p6, 1, 0 }
   0xf   : > { %p1142_p8 = pnand %p681_p5, %p190_p7  ;;  %s1050_s6 = smov [#allocation6]  }
  0x10   : > { %s204_s7 = sshll.u32 %s1050_s6, 4  ;;  %s1051_s9 = smov [#allocation8]   ;;  %s1146_s7 = int_to_ptr.vmem [resolvable:$true] %s204_s7 }
  0x11   : > { %p785_p9 = pneg %p1142_p8  ;;  %s226_s10 = sshll.u32 %s1051_s9, 4  ;;  %s1157_s10 = int_to_ptr.vmem [resolvable:$true] %s226_s10 }
  0x12   : > { %s876_s13 = scalar_lea.hbm %s1349_s1, 1024 }
  0x13   : > { %p1153_p11 = pnand %p785_p9, %p1122_p1  ;;  %p877_p12 = scmp.ne.s32.totalorder %s1349_s1, %s876_s13 }
  0x14   : > { %p883_p5 = scmp.lt.u32.totalorder %s876_s13, %s1349_s1 }
  0x15   : > { %p878_p13 = pneg %p1153_p11 }
  0x17   : > { %p879_p0 = pnand %p878_p13, %p877_p12 }
  0x19   : > { %p880_p3 = pneg %p879_p0 }
  0x1b   : > { %p885_p7 = pnand %p883_p5, %p880_p3 }
  0x1d   : > { %888 = shalt.err (!%p885_p7)
}
  0x1e   : > { %s889_s24 = scalar_lea.vmem %s1146_s7, 1024  ;;  %p897_p1 = scmp.lt.s32.totalorder %s1146_s7, %s1146_s7 }
  0x1f   : > { %p890_p9 = scmp.ne.s32.totalorder %s1146_s7, %s889_s24  ;;  %p898_p12 = scmp.lt.s32.totalorder %s889_s24, %s889_s24 }
  0x21   : > { %p892_p10 = pnand %p890_p9, %p878_p13  ;;  %p899_p0 = por %p898_p12, %p897_p1 }
  0x23   : > { %p893_p6 = pneg %p892_p10 }
  0x25   : > { %p900_p4 = pnand %p899_p0, %p893_p6 }
  0x27   : > { %903 = shalt.err (!%p900_p4)
}
  0x28   : > { %s1052_s25 = smov 64   ;;  %s1053_s6 = smov 4  }
  0x29   : > { %788 = dma.hbm_to_vmem [thread:$0]  (!%p1153_p11), %s1349_s1, 1024, %s1146_s7, [#allocation7], %s1052_s25, %s1052_s25, %s1053_s6  }
  0x2a   : > { %s904_s14 = scalar_lea.hbm %s1351_s3, 1024 }
  0x2b   : > { %p905_p1 = scmp.ne.s32.totalorder %s1351_s3, %s904_s14  ;;  %p911_p10 = scmp.lt.u32.totalorder %s904_s14, %s1351_s3 }
  0x2d   : > { %p907_p4 = pnand %p905_p1, %p878_p13 }
  0x2f   : > { %p908_p6 = pneg %p907_p4 }
  0x31   : > { %p913_p3 = pnand %p911_p10, %p908_p6 }
  0x33   : > { %916 = shalt.err (!%p913_p3)
}
  0x34   : > { %s917_s7 = scalar_lea.vmem %s1157_s10, 1024  ;;  %p925_p12 = scmp.lt.s32.totalorder %s1157_s10, %s1157_s10 }
  0x35   : > { %p918_p5 = scmp.ne.s32.totalorder %s1157_s10, %s917_s7  ;;  %p926_p0 = scmp.lt.s32.totalorder %s917_s7, %s917_s7 }
  0x37   : > { %p920_p7 = pnand %p918_p5, %p878_p13  ;;  %p927_p1 = por %p926_p0, %p925_p12 }
  0x39   : > { %p921_p9 = pneg %p920_p7 }
  0x3b   : > { %p928_p4 = pnand %p927_p1, %p921_p9 }
  0x3d   : > { %931 = shalt.err (!%p928_p4)
}
  0x3e   : > { %791 = dma.hbm_to_vmem [thread:$0]  (!%p1153_p11), %s1351_s3, 1024, %s1157_s10, [#allocation7], %s1052_s25, %s1052_s25, %s1053_s6  }
  0x3f   : > { %s34_s12 = sadd.s32 1, %s1044_s22  ;;  %s41_s13 = sadd.s32 1, %s1036_s20 }
  0x40   : > { %p36_p13 = scmp.ge.s32.totalorder %s34_s12, 2  ;;  %p48_p6 = scmp.ne.s32.totalorder %s1036_s20, %s1032_s19 }
  0x41   : > { %p49_p10 = scmp.eq.s32.totalorder %s1048_s23, 0  ;;  %p802_p3 = scmp.lt.s32.totalorder %s1048_s23, 2 }
  0x42   : > { %s1377_s12 = smov (%p36_p13, %s34_s12), 0  ;;  %p1221_p7 = por %p1126_p2, %p48_p6 }
  0x43   : > { %p50_p5 = por %p49_p10, %p48_p6  ;;  %s38_s14 = ssub.s32 %s1044_s22, %s1377_s12 }
  0x44   : > { %s1364_s8 = scalar_select %p1221_p7, 1, 0 }
  0x45   : > { %s243_s15 = sand.u32 1, %s1036_s20   ;;  %p39_p9 = scmp.eq.s32.totalorder %s38_s14, 0 }
  0x46   : > { %s686_s10 = sshll.u32 %s243_s15, 2  ;;  %s687_s25 = sshll.u32 %s1044_s22, 6 }
  0x47   : > { %s1230_s6 = scalar_select %p39_p9, %s1036_s20, %s41_s13  }
  0x48   : > { %s1235_s24 = scalar_lea.hbm %s1348_s0, %s687_s25  ;;  %s247_s27 = scalar_lea.vmem [#allocation3], %s686_s10 }
  0x49   : > { %s254_s7 = sshll.u32 %s247_s27, 4  ;;  %p1239_p2 = pnand %p802_p3, %p50_p5  ;;  %s1243_s7 = int_to_ptr.vmem [resolvable:$true] %s254_s7 }
  0x4a   : > { %s244_s11 = scalar_lea.sflag [#allocation4], %s243_s15  ;;  %s932_s13 = scalar_lea.hbm %s1235_s24, 64 }
  0x4b   : > { %p933_p11 = scmp.ne.s32.totalorder %s1235_s24, %s932_s13  ;;  %p934_p12 = pneg %p1239_p2 }
  0x4c   : > { %s937_s25 = scalar_lea.hbm %s1348_s0, 128  ;;  %p938_p4 = scmp.lt.u32.totalorder %s1235_s24, %s1348_s0 }
  0x4d   : > { %p935_p0 = pnand %p934_p12, %p933_p11  ;;  %p939_p13 = scmp.lt.u32.totalorder %s937_s25, %s932_s13 }
  0x4e   : > { %p941_p10 = scmp.lt.u32.totalorder %s932_s13, %s1235_s24 }
  0x4f   : > { %p936_p1 = pneg %p935_p0  ;;  %p940_p6 = por %p939_p13, %p938_p4 }
  0x51   : > { %p942_p3 = por %p941_p10, %p940_p6 }
  0x53   : > { %p943_p5 = pnand %p942_p3, %p936_p1 }
  0x55   : > { %946 = shalt.err (!%p943_p5)
}
  0x56   : > { %s947_s15 = scalar_lea.vmem %s1243_s7, 64  ;;  %s1054_s27 = smov [#allocation3]  }
  0x57   : > { %p948_p9 = scmp.ne.s32.totalorder %s1243_s7, %s947_s15  ;;  %s952_s14 = sshll.u32 %s1054_s27, 4  ;;  %s953_s14 = int_to_ptr.vmem [resolvable:$false] %s952_s14 }
  0x58   : > { %s954_s10 = scalar_lea.vmem %s953_s14, 128  ;;  %p955_p7 = scmp.lt.s32.totalorder %s1243_s7, %s953_s14 }
  0x59   : > { %p950_p11 = pnand %p948_p9, %p934_p12  ;;  %p956_p4 = scmp.lt.s32.totalorder %s954_s10, %s947_s15 }
  0x5b   : > { %p951_p0 = pneg %p950_p11  ;;  %p957_p13 = por %p956_p4, %p955_p7 }
  0x5d   : > { %p958_p6 = pnand %p957_p13, %p951_p0 }
  0x5f   : > { %961 = shalt.err (!%p958_p6)
}
  0x60   : > { %795 = dma.hbm_to_vmem [thread:$0]  (!%p1239_p2), %s1235_s24, 64, %s1243_s7, %s244_s11  }
  0x61   : > { %263 = sbr.rel (%p1142_p8) target bundleno = 590 (0x24e), region = 40  ;;  %s1273_s13 = sand.u32 (!%p1142_p8), 1, %s1032_s19  }
  0x62   : > { %s689_s25 = sshll.u32 (!%p1142_p8), %s1273_s13, 2  ;;  %s266_s16 = scalar_lea.sflag (!%p1142_p8), [#allocation4], %s1273_s13 }
  0x63   : > { %s1277_s17 = scalar_lea.vmem (!%p1142_p8), [#allocation3], %s689_s25  ;;  %p1366_p7 = scmp.ne.s32.totalorder (!%p1142_p8), %s1360_s28, 0 }
  0x68   : > { %1015 = dma.done.wait (%p1366_p7), %s266_s16, 64  }
  0x69   : > { %1017 = vsyncadd (%p1366_p7), %s266_s16, 4294967232  ;;  %p1367_p2 = scmp.ne.s32.totalorder %s1358_s26, 0 }
  0x6b   : > { %1019 = dma.done.wait (%p1367_p2), [#allocation7], 2048  }
  0x6c   : > { %1021 = vsyncadd (%p1367_p2), [#allocation7], 4294965248  ;;  %v1055_v0 = vmov 0.0   ;;  %vm1056_vm0 = vmmov 0   ;;  %v860_v1 = vld [vmem:[#allocation6] sm:$0xff]   ;;  %v861_v2 = vld [vmem:[#allocation6 + $0x8] sm:$0xff]  }
  0x6d   : > { %733 = vmatprep.subr.bf16.mxu0 %v1055_v0  ;;  %749 = vmatprep.mubr.msk.bf16.mxu0 %vm1056_vm0, %v1055_v0  ;;  %v862_v3 = vld [vmem:[#allocation6 + $0x10] sm:$0xff]   ;;  %v868_v4 = vld [vmem:[#allocation8] sm:$0xff]   ;;  %v863_v5 = vld [vmem:[#allocation6 + $0x18] sm:$0xff]   ;;  %s692_s30 = sshll.u32 %s1273_s13, 3  ;;  %s712_s9 = sshll.u32 %s1040_s21, 7 }
  0x6e   : > { %753 = vmatprep.subr.bf16.mxu1 %v1055_v0  ;;  %769 = vmatprep.mubr.msk.bf16.mxu1 %vm1056_vm0, %v1055_v0  ;;  %v869_v6 = vld [vmem:[#allocation8 + $0x8] sm:$0xff]   ;;  %v864_v7 = vld [vmem:[#allocation6 + $0x20] sm:$0xff]   ;;  %v870_v8 = vld [vmem:[#allocation8 + $0x10] sm:$0xff]   ;;  %s306_s11 = scalar_lea.vmem [#allocation9], %s692_s30  ;;  %s1299_s10 = scalar_lea.hbm %s1353_s5, %s712_s9 }
  0x6f   : > { %734 = vmatpush3.bf16.msra.mxu0 %v860_v1  ;;  %754 = vmatpush3.bf16.msra.mxu1 %v868_v4  ;;  %v865_v9 = vld [vmem:[#allocation6 + $0x28] sm:$0xff]   ;;  %v871_v10 = vld [vmem:[#allocation8 + $0x18] sm:$0xff]   ;;  %v866_v11 = vld [vmem:[#allocation6 + $0x30] sm:$0xff]   ;;  %s566_s15 = sshll.u32 %s306_s11, 4  ;;  %s553_s25 = scalar_lea.sflag [#allocation5], %s1273_s13  ;;  %s1301_s15 = int_to_ptr.vmem [resolvable:$true] %s566_s15 }
  0x70   : > { %735 = vmatprep.subr.bf16.mxu0 %v1055_v0  ;;  %755 = vmatprep.subr.bf16.mxu1 %v1055_v0  ;;  %v872_v12 = vld [vmem:[#allocation8 + $0x20] sm:$0xff]   ;;  %v867_v13 = vld [vmem:[#allocation6 + $0x38] sm:$0xff]   ;;  %v873_v14 = vld [vmem:[#allocation8 + $0x28] sm:$0xff]   ;;  %s962_s21 = scalar_lea.vmem %s1301_s15, 128  ;;  %p1368_p12 = scmp.ne.s32.totalorder %s1364_s8, 0 }
  0x71   : > { %v317_v15 = vld [vmem:[%s1277_s17] sm:$0xf]  ;;  %v874_v16 = vld [vmem:[#allocation8 + $0x30] sm:$0xff]   ;;  %p963_p8 = scmp.ne.s32.totalorder %s1301_s15, %s962_s21  ;;  %s1057_s16 = smov [#allocation9]  }
  0x72   : > { %v875_v17 = vld [vmem:[#allocation8 + $0x38] sm:$0xff]   ;;  %s966_s17 = sshll.u32 %s1057_s16, 4  ;;  %s967_s17 = int_to_ptr.vmem [resolvable:$false] %s966_s17 }
  0x73   : > { %736 = vmatpush3.bf16.msra.mxu0 %v861_v2  ;;  %756 = vmatpush3.bf16.msra.mxu1 %v869_v6  ;;  %v693_v18 = vld [vmem:[%s1350_s2] ss:$0 sm:$0xff]  ;;  %p964_p1 = pnand %p963_p8, %p1368_p12  ;;  %s968_s26 = scalar_lea.vmem %s967_s17, 256 }
  0x74   : > { %737 = vmatprep.subr.bf16.mxu0 %v1055_v0  ;;  %757 = vmatprep.subr.bf16.mxu1 %v1055_v0  ;;  %v710_v27 = vld [vmem:[%s1352_s4] ss:$0 sm:$0xff]  ;;  %p969_p3 = scmp.lt.s32.totalorder %s1301_s15, %s967_s17  ;;  %p970_p5 = scmp.lt.s32.totalorder %s968_s26, %s962_s21 }
  0x75   : > { %p965_p10 = pneg %p964_p1 }
  0x76   : > { %p971_p9 = por %p970_p5, %p969_p3 }
  0x77   : > { %738 = vmatpush3.bf16.msra.mxu0 %v862_v3  ;;  %758 = vmatpush3.bf16.msra.mxu1 %v870_v8 }
  0x78   : > { %739 = vmatprep.subr.bf16.mxu0 %v1055_v0  ;;  %759 = vmatprep.subr.bf16.mxu1 %v1055_v0  ;;  %p972_p11 = pnand %p971_p9, %p965_p10 }
  0x7b   : > { %740 = vmatpush3.bf16.msra.mxu0 %v863_v5  ;;  %760 = vmatpush3.bf16.msra.mxu1 %v871_v10 }
  0x7c   : > { %741 = vmatprep.subr.bf16.mxu0 %v1055_v0  ;;  %761 = vmatprep.subr.bf16.mxu1 %v1055_v0 }
  0x7f   : > { %742 = vmatpush3.bf16.msra.mxu0 %v864_v7  ;;  %762 = vmatpush3.bf16.msra.mxu1 %v872_v12 }
  0x80   : > { %743 = vmatprep.subr.bf16.mxu0 %v1055_v0  ;;  %763 = vmatprep.subr.bf16.mxu1 %v1055_v0 }
  0x83   : > { %744 = vmatpush3.bf16.msra.mxu0 %v865_v9  ;;  %764 = vmatpush3.bf16.msra.mxu1 %v873_v14 }
  0x84   : > { %745 = vmatprep.subr.bf16.mxu0 %v1055_v0  ;;  %765 = vmatprep.subr.bf16.mxu1 %v1055_v0 }
  0x87   : > { %746 = vmatpush3.bf16.msra.mxu0 %v866_v11  ;;  %766 = vmatpush3.bf16.msra.mxu1 %v874_v16 }
  0x88   : > { %747 = vmatprep.subr.bf16.mxu0 %v1055_v0  ;;  %767 = vmatprep.subr.bf16.mxu1 %v1055_v0 }
  0x8b   : > { %748 = vmatpush3.bf16.msra.mxu0 %v867_v13  ;;  %768 = vmatpush3.bf16.msra.mxu1 %v875_v17 }
  0x8e   : > { %750 = vmatmul.mubr.bf16.vlgmr.msra.gmra.mrb[0].mxu0 %v317_v15 }
 0x161   : > { %v423_v19 = vpop.f32.mrb[0].mxu0 }
 0x162   : > { %v424_v20 = vadd.f32 %v693_v18, %v423_v19  ;;  %v751_v21 = vpop.f32.mrb[1].mxu0 }
 0x163   : > { %v426_v22 = vpop.f32.mrb[2].mxu0 }
 0x164   : > { %v429_v23 = vmul.f32 0.1, %v424_v20  ;;  %v752_v24 = vpop.f32.mrb[3].mxu0 }
 0x166   : > { %v430_v25 = vmax.f32 %v424_v20, %v429_v23 }
 0x168   : > { %v432_v26 = vpack.c.bf16 %v430_v25, %v430_v25 }
 0x16a   : > { %770 = vmatmul.mubr.bf16.vlgmr.msra.gmra.mrb[0].mxu1 %v432_v26 }
 0x23d   : > { %v531_v28 = vpop.f32.mrb[0].mxu1 }
 0x23e   : > { %v550_v29 = vadd.f32 %v710_v27, %v531_v28  ;;  %v771_v30 = vpop.f32.mrb[1].mxu1 }
 0x23f   : > { %v534_v31 = vpop.f32.mrb[2].mxu1 }
 0x240   : > { %551 = vst [vmem:[%s306_s11] sm:$0xff] %v550_v29  ;;  %v772_v32 = vpop.f32.mrb[3].mxu1 }
 0x241   : > { %975 = shalt.err (!%p972_p11)
}
 0x242   : > { %s976_s13 = scalar_lea.hbm %s1299_s10, 128  ;;  %s980_s24 = scalar_lea.hbm %s1353_s5, 256 }
 0x243   : > { %p977_p0 = scmp.ne.s32.totalorder %s1299_s10, %s976_s13  ;;  %p981_p6 = scmp.lt.u32.totalorder %s1299_s10, %s1353_s5 }
 0x244   : > { %p982_p7 = scmp.lt.u32.totalorder %s980_s24, %s976_s13  ;;  %p984_p8 = scmp.lt.u32.totalorder %s976_s13, %s1299_s10 }
 0x245   : > { %p978_p4 = pnand %p977_p0, %p1368_p12 }
 0x246   : > { %p983_p2 = por %p982_p7, %p981_p6 }
 0x247   : > { %p979_p13 = pneg %p978_p4 }
 0x248   : > { %p985_p1 = por %p984_p8, %p983_p2 }
 0x24a   : > { %p986_p10 = pnand %p985_p1, %p979_p13 }
 0x24c   : > { %989 = shalt.err (!%p986_p10)
}
 0x24d   : > { %783 = dma.vmem_to_hbm [thread:$0]  (%p1368_p12), %s1301_s15, 128, %s1299_s10, %s553_s25  }
 0x24e PF: > { %s578_s11 = sand.u32 1, %s1028_s18   ;;  %p1369_p3 = scmp.ne.s32.totalorder %s1361_s29, 0 }
 0x24f   : > { %p1370_p5 = scmp.ge.s32.totalorder %s1048_s23, 2  ;;  %s579_s27 = scalar_lea.sflag [#allocation5], %s578_s11 }
 0x251   : > { %p797_p9 = pnand %p1370_p5, %p1369_p3 }
 0x253   : > { %1023 = dma.done.wait (!%p797_p9), %s579_s27, 128  }
 0x254   : > { %1025 = vsyncadd (!%p797_p9), %s579_s27, 4294967168  ;;  %s22_s23 = sadd.s32 1, %s1048_s23   ;;  %s1371_s18 = smov %s1032_s19 }
 0x255   : > { %p19_p11 = scmp.ge.s32.totalorder %s22_s23, 4   ;;  %s1372_s19 = smov %s1036_s20 }
 0x256   : > { %s1373_s20 = smov %s1230_s6  ;;  %s1374_s21 = smov %s1044_s22 }
 0x257   : > { %s1375_s22 = smov %s1377_s12  ;;  %21 = sbr.rel (!%p19_p11) target bundleno = 7 (0x7), region = 106 }
 0x25e   :  { %584 = vsyncpa [#allocation4], 1 }
 0x25f   :  { %586 = vsyncpa [#allocation4 + $0x1], 1 }
 0x260   :  { %587 = vsyncpa [#allocation7], 1 }
 0x261   :  { %588 = vsyncpa [#allocation5], 1 }
 0x262   :  { %590 = vsyncpa [#allocation5 + $0x1], 1 }

</bundles_post_ra>
